<compile_context>
chip_gen: v7x
topology: tpu7x:2x2x1
jax: 0.10.0
libtpu: 0.0.40
codegen_flags: <defaults>
</compile_context>

<pallas_src>
import jax
import jax.numpy as jnp
from jax.experimental import pallas as pl
from jax.experimental.pallas import tpu as pltpu


def _round_up(x, m):
    return ((x + m - 1) // m) * m


def critic_kernel(x_ref, w1_ref, b1_ref, w2_ref, b2_ref, w3_ref, b3_ref, o_ref):
    # x_ref : (TILE_B, S) f32 or bf16 (streamed)
    # w1_ref: (H, S) bf16     b1_ref: (H, 1) f32
    # w2_ref: (H, H) bf16     b2_ref: (H, 1) f32
    # w3_ref: (1, H) f32      b3_ref: (1, 1) f32 in SMEM
    # o_ref : (1, TILE_B) f32 (lane-dense output slab, unmasked vst)

    xb = x_ref[...]
    if xb.dtype != jnp.bfloat16:          # skip the cast if input is already bf16
        xb = xb.astype(jnp.bfloat16)

    # Layer 1: (H, S) @ (S, TILE_B) -> (H, TILE_B); contract last dims of both
    # operands (same pattern as q @ k.T), bf16 in / f32 accumulate.
    h1 = jax.lax.dot_general(
        w1_ref[...], xb,
        dimension_numbers=(((1,), (1,)), ((), ())),
        preferred_element_type=jnp.float32,
    )
    h1 = jnp.maximum(h1 + b1_ref[...], 0.0)          # f32 bias + ReLU (VPU)

    # Layer 2: (H, H) @ (H, TILE_B) -> (H, TILE_B), bf16 in / f32 accumulate.
    h2 = jnp.dot(w2_ref[...], h1.astype(jnp.bfloat16),
                 preferred_element_type=jnp.float32)
    h2 = jnp.maximum(h2 + b2_ref[...], 0.0)

    # Layer 3 (128 -> 1) on the MXU (it has slack): (1,H) f32 @ (H,TILE_B) f32.
    # Frees the VPU multiply + cross-vreg add tree without an extra bf16 cast.
    out = jnp.dot(w3_ref[...], h2, preferred_element_type=jnp.float32)
    out = out + b3_ref[0, 0]
    o_ref[...] = out.astype(o_ref.dtype)


def critic_forward(state, params, *, tile_b_cap=4096):
    """state: (B, state_dim) float32 or bfloat16 -> (B, 1) float32."""
    w1, b1, w2, b2, w3, b3 = params          # torch layouts: (out, in), (out,)
    B, S = state.shape
    H = w1.shape[0]

    # ---- batch-tile selection -------------------------------------------
    # Multiple of 256 (lane/sublane friendly), capped at tile_b_cap so the
    # per-step working set stays ~10-20 MiB, and split so the grid has >= 2
    # "parallel" steps whenever B allows it (keeps both v7x TCs busy).
    tile_b = min(tile_b_cap, _round_up(max(B, 1), 256))
    if B > 256:
        tile_b = min(tile_b, _round_up(pl.cdiv(B, 2), 256))
    grid_b = pl.cdiv(B, tile_b)
    b_pad = grid_b * tile_b   # padded OUTPUT width only; `state` is NOT padded.

    # Weights for the MXU in bf16; everything touched by the VPU stays f32.
    w1b = w1.astype(jnp.bfloat16)
    w2b = w2.astype(jnp.bfloat16)
    b1c = b1.reshape(H, 1).astype(jnp.float32)
    b2c = b2.reshape(H, 1).astype(jnp.float32)
    w3r = w3.reshape(1, H).astype(jnp.float32)     # row layout: MXU LHS of layer 3
    b3c = b3.reshape(1, 1).astype(jnp.float32)

    flops = 2 * b_pad * (S * H + H * H + H)
    bytes_accessed = (state.size * state.dtype.itemsize + b_pad * 4
                      + w1b.size * 2 + w2b.size * 2
                      + (b1c.size + b2c.size + w3r.size + b3c.size) * 4)

    out = pl.pallas_call(
        critic_kernel,
        out_shape=jax.ShapeDtypeStruct((1, b_pad), jnp.float32),
        grid=(grid_b,),
        in_specs=[
            pl.BlockSpec((tile_b, S), lambda i: (i, 0)),   # streamed state tile
            pl.BlockSpec((H, S), lambda i: (0, 0)),        # W1 (VMEM-resident)
            pl.BlockSpec((H, 1), lambda i: (0, 0)),        # b1
            pl.BlockSpec((H, H), lambda i: (0, 0)),        # W2
            pl.BlockSpec((H, 1), lambda i: (0, 0)),        # b2
            pl.BlockSpec((1, H), lambda i: (0, 0)),        # W3 (row)
            pl.BlockSpec(memory_space=pltpu.MemorySpace.SMEM),  # b3 scalar
        ],
        out_specs=pl.BlockSpec((1, tile_b), lambda i: (0, i)),
        compiler_params=pltpu.CompilerParams(
            dimension_semantics=("parallel",),
            # Explicit so larger tiles don't trip v5e's 16 MiB scoped default;
            # 32 MiB is <= the default/physical budget on v6e/v7x as well.
            vmem_limit_bytes=32 * 1024 * 1024,
        ),
        cost_estimate=pl.CostEstimate(
            flops=flops, transcendentals=0, bytes_accessed=bytes_accessed),
    )(state, w1b, b1c, w2b, b2c, w3r, b3c)

    return out[0, :B].reshape(B, 1)


def init_params(key, state_dim, hidden=128):
    """Torch nn.Linear-style init: W ~ U[-1/sqrt(fan_in), 1/sqrt(fan_in)],
    weight layout (out_features, in_features), bias (out_features,)."""
    ks = jax.random.split(key, 6)

    def unif(k, shape, fan_in):
        bound = 1.0 / jnp.sqrt(jnp.float32(fan_in))
        return jax.random.uniform(k, shape, jnp.float32, -bound, bound)

    w1 = unif(ks[0], (hidden, state_dim), state_dim)
    b1 = unif(ks[1], (hidden,), state_dim)
    w2 = unif(ks[2], (hidden, hidden), hidden)
    b2 = unif(ks[3], (hidden,), hidden)
    w3 = unif(ks[4], (1, hidden), hidden)
    b3 = unif(ks[5], (1,), hidden)
    return (w1, b1, w2, b2, w3, b3)


def critic_reference(state, params):
    w1, b1, w2, b2, w3, b3 = params
    h1 = jnp.maximum(state @ w1.T + b1, 0.0)
    h2 = jnp.maximum(h1 @ w2.T + b2, 0.0)
    return h2 @ w3.T + b3


if __name__ == "__main__":
    key = jax.random.PRNGKey(0)
    k_param, k_state = jax.random.split(key)

    batch = 64
    state_dim = 32

    params = init_params(k_param, state_dim)
    state = jax.random.normal(k_state, (batch, state_dim), jnp.float32)

    out = critic_forward(state, params)
    out = jax.block_until_ready(out)

    ref = critic_reference(state, params)
    assert out.shape == (batch, 1), out.shape
    # bf16 matmul inputs with f32 accumulation -> slightly looser tolerance.
    assert jnp.allclose(out, ref, atol=2e-2, rtol=2e-2), (out, ref)

    print("KERNEL_OK")
</pallas_src>

<mosaic_0001>
module attributes {stable_mosaic.version = 11 : i64} {
  func.func @critic_kernel(%arg0: i32, %arg1: memref<256x32xf32, #tpu.memory_space<vmem>>, %arg2: memref<128x32xbf16, #tpu.memory_space<vmem>>, %arg3: memref<128x1xf32, #tpu.memory_space<vmem>>, %arg4: memref<128x128xbf16, #tpu.memory_space<vmem>>, %arg5: memref<128x1xf32, #tpu.memory_space<vmem>>, %arg6: memref<1x128xf32, #tpu.memory_space<vmem>>, %arg7: memref<1x1xf32, #tpu.memory_space<smem>>, %arg8: memref<1x256xf32, #tpu.memory_space<vmem>>) attributes {dimension_semantics = [#tpu.dimension_semantics<parallel>], iteration_bounds = array<i64: 1>, scalar_prefetch = 0 : i64, scratch_operands = 0 : i64, tpu.core_type = #tpu.core_type<tc>, window_params = [{transform_indices = @transform_0, window_bounds = array<i64: 256, 32>}, {pipeline_mode = #tpu.pipeline_mode<synchronous>, transform_indices = @transform_1, window_bounds = array<i64: 128, 32>}, {pipeline_mode = #tpu.pipeline_mode<synchronous>, transform_indices = @transform_2, window_bounds = array<i64: 128, 1>}, {pipeline_mode = #tpu.pipeline_mode<synchronous>, transform_indices = @transform_3, window_bounds = array<i64: 128, 128>}, {pipeline_mode = #tpu.pipeline_mode<synchronous>, transform_indices = @transform_4, window_bounds = array<i64: 128, 1>}, {pipeline_mode = #tpu.pipeline_mode<synchronous>, transform_indices = @transform_5, window_bounds = array<i64: 1, 128>}, {transform_indices = @transform_6, window_bounds = array<i64: 1, 1>}, {transform_indices = @transform_7, window_bounds = array<i64: 1, 256>}]} {
    %c0 = arith.constant 0 : index
    %c0_0 = arith.constant 0 : index
    %0 = vector.load %arg1[%c0, %c0_0] : memref<256x32xf32, #tpu.memory_space<vmem>>, vector<256x32xf32>
    %1 = arith.truncf %0 : vector<256x32xf32> to vector<256x32xbf16>
    %c0_1 = arith.constant 0 : index
    %c0_2 = arith.constant 0 : index
    %2 = vector.load %arg2[%c0_1, %c0_2] : memref<128x32xbf16, #tpu.memory_space<vmem>>, vector<128x32xbf16>
    %cst = arith.constant dense<0.000000e+00> : vector<128x256xf32>
    %3 = tpu.matmul %2, %1, %cst {dimension_numbers = #tpu.dot_dimension_numbers<[1], [1], [0], [0], [0, 0, 1, 0], [], []>} : vector<128x32xbf16>, vector<256x32xbf16>, vector<128x256xf32> -> vector<128x256xf32>
    %c0_3 = arith.constant 0 : index
    %c0_4 = arith.constant 0 : index
    %4 = vector.load %arg3[%c0_3, %c0_4] : memref<128x1xf32, #tpu.memory_space<vmem>>, vector<128x1xf32>
    %5 = vector.broadcast %4 : vector<128x1xf32> to vector<128x256xf32>
    %6 = arith.addf %3, %5 : vector<128x256xf32>
    %cst_5 = arith.constant 0.000000e+00 : f32
    %7 = vector.broadcast %cst_5 : f32 to vector<128x256xf32>
    %8 = arith.maximumf %6, %7 : vector<128x256xf32>
    %c0_6 = arith.constant 0 : index
    %c0_7 = arith.constant 0 : index
    %9 = vector.load %arg4[%c0_6, %c0_7] : memref<128x128xbf16, #tpu.memory_space<vmem>>, vector<128x128xbf16>
    %10 = arith.truncf %8 : vector<128x256xf32> to vector<128x256xbf16>
    %cst_8 = arith.constant dense<0.000000e+00> : vector<128x256xf32>
    %11 = tpu.matmul %9, %10, %cst_8 {dimension_numbers = #tpu.dot_dimension_numbers<[1], [0], [0], [1], [0, 0, 1, 1], [], []>} : vector<128x128xbf16>, vector<128x256xbf16>, vector<128x256xf32> -> vector<128x256xf32>
    %c0_9 = arith.constant 0 : index
    %c0_10 = arith.constant 0 : index
    %12 = vector.load %arg5[%c0_9, %c0_10] : memref<128x1xf32, #tpu.memory_space<vmem>>, vector<128x1xf32>
    %13 = vector.broadcast %12 : vector<128x1xf32> to vector<128x256xf32>
    %14 = arith.addf %11, %13 : vector<128x256xf32>
    %cst_11 = arith.constant 0.000000e+00 : f32
    %15 = vector.broadcast %cst_11 : f32 to vector<128x256xf32>
    %16 = arith.maximumf %14, %15 : vector<128x256xf32>
    %c0_12 = arith.constant 0 : index
    %c0_13 = arith.constant 0 : index
    %17 = vector.load %arg6[%c0_12, %c0_13] : memref<1x128xf32, #tpu.memory_space<vmem>>, vector<1x128xf32>
    %cst_14 = arith.constant dense<0.000000e+00> : vector<1x256xf32>
    %18 = tpu.matmul %17, %16, %cst_14 {dimension_numbers = #tpu.dot_dimension_numbers<[1], [0], [0], [1], [0, 0, 1, 1], [], []>} : vector<1x128xf32>, vector<128x256xf32>, vector<1x256xf32> -> vector<1x256xf32>
    %c0_15 = arith.constant 0 : index
    %c0_16 = arith.constant 0 : index
    %19 = memref.load %arg7[%c0_15, %c0_16] : memref<1x1xf32, #tpu.memory_space<smem>>
    %20 = vector.broadcast %19 : f32 to vector<1x256xf32>
    %21 = arith.addf %18, %20 : vector<1x256xf32>
    %c0_17 = arith.constant 0 : index
    %c0_18 = arith.constant 0 : index
    %22 = vector.load %arg8[%c0_17, %c0_18] : memref<1x256xf32, #tpu.memory_space<vmem>>, vector<1x256xf32>
    tpu.vector_store %arg8[%c0_17, %c0_18], %21 {strides = array<i32>} : memref<1x256xf32, #tpu.memory_space<vmem>>, vector<1x256xf32>,
    return
  }
  func.func @transform_0(%arg0: i32) -> (i32, i32) {
    %c0_i32 = arith.constant 0 : i32
    %c0_i32_0 = arith.constant 0 : i32
    return %arg0, %c0_i32 : i32, i32
  }
  func.func @transform_1(%arg0: i32) -> (i32, i32) {
    %c0_i32 = arith.constant 0 : i32
    %c0_i32_0 = arith.constant 0 : i32
    %c0_i32_1 = arith.constant 0 : i32
    return %c0_i32, %c0_i32_0 : i32, i32
  }
  func.func @transform_2(%arg0: i32) -> (i32, i32) {
    %c0_i32 = arith.constant 0 : i32
    %c0_i32_0 = arith.constant 0 : i32
    %c0_i32_1 = arith.constant 0 : i32
    return %c0_i32, %c0_i32_0 : i32, i32
  }
  func.func @transform_3(%arg0: i32) -> (i32, i32) {
    %c0_i32 = arith.constant 0 : i32
    %c0_i32_0 = arith.constant 0 : i32
    %c0_i32_1 = arith.constant 0 : i32
    return %c0_i32, %c0_i32_0 : i32, i32
  }
  func.func @transform_4(%arg0: i32) -> (i32, i32) {
    %c0_i32 = arith.constant 0 : i32
    %c0_i32_0 = arith.constant 0 : i32
    %c0_i32_1 = arith.constant 0 : i32
    return %c0_i32, %c0_i32_0 : i32, i32
  }
  func.func @transform_5(%arg0: i32) -> (i32, i32) {
    %c0_i32 = arith.constant 0 : i32
    %c0_i32_0 = arith.constant 0 : i32
    %c0_i32_1 = arith.constant 0 : i32
    return %c0_i32, %c0_i32_0 : i32, i32
  }
  func.func @transform_6(%arg0: i32) -> (i32, i32) {
    %c0_i32 = arith.constant 0 : i32
    %c0_i32_0 = arith.constant 0 : i32
    %c0_i32_1 = arith.constant 0 : i32
    return %c0_i32, %c0_i32_0 : i32, i32
  }
  func.func @transform_7(%arg0: i32) -> (i32, i32) {
    %c0_i32 = arith.constant 0 : i32
    %c0_i32_0 = arith.constant 0 : i32
    return %c0_i32, %arg0 : i32, i32
  }
}

</mosaic_0001>

<bundles_post_ra>
// kernel: tpu_custom_call.1
= control target key start
LH: loop header
LB: loop body
LE: loop exit
PB: predicated region body
PF: predicated region fallthrough
CT: control target
= control target key end

     0   :  { %vm229_vm0 = vcmask 261120   ;;  %v1021_v7 = vmov 0   ;;  %s1369_s0 = inlined_call_operand.vmem [shape: f32[64,32], index: 0, kind: input, shape index: {}]   ;;  %s1370_s1 = inlined_call_operand.vmem [shape: bf16[128,32], index: 1, kind: input, shape index: {}]   ;;  %s1371_s2 = inlined_call_operand.vmem [shape: f32[128,1], index: 2, kind: input, shape index: {}]   ;;  %s1372_s3 = inlined_call_operand.vmem [shape: bf16[128,128], index: 3, kind: input, shape index: {}]   ;;  %s1373_s4 = inlined_call_operand.vmem [shape: f32[128,1], index: 4, kind: input, shape index: {}]   ;;  %s1374_s5 = inlined_call_operand.vmem [shape: f32[1,128], index: 5, kind: input, shape index: {}]   ;;  %s1375_s6 = inlined_call_operand.<no memory space> [shape: f32[1,1], index: 6, kind: input, shape index: {}]   ;;  %s1376_s7 = inlined_call_operand.hbm [shape: f32[1,256], index: 7, kind: output, shape index: {}]  }
   0x1   :  { %v45_v0 = vld [vmem:[%s1369_s0 + $0x80] sm:$0xff]  ;;  %v46_v1 = vld [vmem:[%s1369_s0 + $0x88] sm:$0xff]  ;;  %v47_v5 = vld [vmem:[%s1369_s0 + $0x90] sm:$0xff]  ;;  %979 = vset.pattern.permute.xlu0 %v1021_v7  ;;  %980 = vset.pattern.permute.xlu1 %v1021_v7 }
   0x2   :  { %v29_v2 = vld [vmem:[%s1369_s0] sm:$0xff]  ;;  %v69_v3 = vpack.c.bf16 %v46_v1, %v45_v0  ;;  %v30_v4 = vld [vmem:[%s1369_s0 + $0x8] sm:$0xff]  ;;  %v48_v6 = vld [vmem:[%s1369_s0 + $0x98] sm:$0xff]  ;;  %655 = vmatprep.mubr.bf16.mxu1 %v1021_v7 }
   0x3   :  { %v61_v8 = vpack.c.bf16 %v30_v4, %v29_v2  ;;  %v70_v9 = vpack.c.bf16 %v48_v6, %v47_v5  ;;  %v31_v10 = vld [vmem:[%s1369_s0 + $0x10] sm:$0xff]  ;;  %v32_v11 = vld [vmem:[%s1369_s0 + $0x18] sm:$0xff]  ;;  %v49_v14 = vld [vmem:[%s1369_s0 + $0xa0] sm:$0xff] }
   0x4   :  { %967 = vmatprep.subr.msk.bf16.mxu0 %vm229_vm0, %v69_v3  ;;  %v62_v13 = vpack.c.bf16 %v32_v11, %v31_v10  ;;  %v50_v15 = vld [vmem:[%s1369_s0 + $0xa8] sm:$0xff]  ;;  %v33_v18 = vld [vmem:[%s1369_s0 + $0x20] sm:$0xff]  ;;  %v51_v22 = vld [vmem:[%s1369_s0 + $0xb0] sm:$0xff] }
   0x5   :  { %v255_v12 = vsel %vm229_vm0, %v61_v8, 0  ;;  %v71_v17 = vpack.c.bf16 %v50_v15, %v49_v14  ;;  %v34_v19 = vld [vmem:[%s1369_s0 + $0x28] sm:$0xff]  ;;  %v1111_v20 = vld [vmem:[%s1370_s1] sm:$0xff]   ;;  %v52_v23 = vld [vmem:[%s1369_s0 + $0xb8] sm:$0xff] }
   0x6   :  { %904 = vmatpush3.bf16.xpose.msra.mxu0 %v255_v12  ;;  %v258_v16 = vsel %vm229_vm0, %v62_v13, 0  ;;  %919 = vmatprep.mubr.msk.bf16.mxu0 %vm229_vm0, %v1111_v20  ;;  %v63_v21 = vpack.c.bf16 %v34_v19, %v33_v18  ;;  %v93_v24 = vld [vmem:[%s1371_s2] sm:$0xff]  ;;  %v72_v26 = vpack.c.bf16 %v52_v23, %v51_v22  ;;  %v35_v27 = vld [vmem:[%s1369_s0 + $0x30] sm:$0xff]  ;;  %v36_v29 = vld [vmem:[%s1369_s0 + $0x38] sm:$0xff] }
   0x7   :  { %968 = vmatprep.subr.msk.bf16.mxu0 %vm229_vm0, %v70_v9  ;;  %111 = vperm.xlu0 %979, %v93_v24   ;;  %v95_v28 = vld [vmem:[%s1371_s2 + $0x10] sm:$0xff]  ;;  %v94_v30 = vld [vmem:[%s1371_s2 + $0x8] sm:$0xff]  ;;  %v96_v31 = vld [vmem:[%s1371_s2 + $0x18] sm:$0xff]  ;;  %v64_v32 = vpack.c.bf16 %v36_v29, %v35_v27 }
   0x8   :  { %v261_v25 = vsel %vm229_vm0, %v63_v21, 0  ;;  %121 = vperm.xlu1 %980, %v95_v28   ;;  %v37_v33 = vld [vmem:[%s1369_s0 + $0x40] sm:$0xff]  ;;  %v38_v34 = vld [vmem:[%s1369_s0 + $0x48] sm:$0xff]  ;;  %v99_v42 = vld [vmem:[%s1371_s2 + $0x30] sm:$0xff] }
   0x9   :  { %v53_v35 = vld [vmem:[%s1369_s0 + $0xc0] sm:$0xff]  ;;  %v54_v36 = vld [vmem:[%s1369_s0 + $0xc8] sm:$0xff]  ;;  %v65_v39 = vpack.c.bf16 %v38_v34, %v37_v33  ;;  %v264_v40 = vsel %vm229_vm0, %v64_v32, 0  ;;  %v100_v43 = vld [vmem:[%s1371_s2 + $0x38] sm:$0xff] }
   0xa   :  { %v97_v37 = vld [vmem:[%s1371_s2 + $0x20] sm:$0xff]  ;;  %v98_v38 = vld [vmem:[%s1371_s2 + $0x28] sm:$0xff]  ;;  %v73_v41 = vpack.c.bf16 %v54_v36, %v53_v35  ;;  %v55_v45 = vld [vmem:[%s1369_s0 + $0xd0] sm:$0xff] }
   0xb   :  { %116 = vperm.xlu0 %979, %v94_v30   ;;  %v267_v44 = vsel %vm229_vm0, %v65_v39, 0  ;;  %v56_v46 = vld [vmem:[%s1369_s0 + $0xd8] sm:$0xff]  ;;  %v101_v47 = vld [vmem:[%s1371_s2 + $0x40] sm:$0xff]  ;;  %v102_v48 = vld [vmem:[%s1371_s2 + $0x48] sm:$0xff] }
   0xc   :  { %126 = vperm.xlu1 %980, %v96_v31   ;;  %v74_v49 = vpack.c.bf16 %v56_v46, %v55_v45 }
   0xe   :  { %906 = vmatpush3.bf16.xpose.msra.mxu0 %v258_v16 }
   0xf   :  { %969 = vmatprep.subr.msk.bf16.mxu0 %vm229_vm0, %v71_v17  ;;  %131 = vperm.xlu0 %979, %v97_v37  }
  0x10   :  { %136 = vperm.xlu1 %980, %v98_v38  }
  0x13   :  { %141 = vperm.xlu0 %979, %v99_v42  }
  0x14   :  { %146 = vperm.xlu1 %980, %v100_v43  }
  0x16   :  { %908 = vmatpush3.bf16.xpose.msra.mxu0 %v261_v25 }
  0x17   :  { %970 = vmatprep.subr.msk.bf16.mxu0 %vm229_vm0, %v72_v26  ;;  %151 = vperm.xlu0 %979, %v101_v47  }
  0x1e   :  { %910 = vmatpush3.bf16.xpose.msra.mxu0 %v264_v40 }
  0x1f   :  { %971 = vmatprep.subr.msk.bf16.mxu0 %vm229_vm0, %v73_v41 }
  0x20   :  { %13 = vsyncpa [#allocation4], 0  ;;  %v39_v50 = vld [vmem:[%s1369_s0 + $0x50] sm:$0xff]  ;;  %v40_v51 = vld [vmem:[%s1369_s0 + $0x58] sm:$0xff]  ;;  %156 = vperm.xlu1 %980, %v102_v48   ;;  %s1024_s18 = smov [#allocation3]  }
  0x21   :  { %v103_v52 = vld [vmem:[%s1371_s2 + $0x50] sm:$0xff]  ;;  %v104_v53 = vld [vmem:[%s1371_s2 + $0x58] sm:$0xff]  ;;  %v66_v54 = vpack.c.bf16 %v40_v51, %v39_v50  ;;  %v57_v55 = vld [vmem:[%s1369_s0 + $0xe0] sm:$0xff]  ;;  %s871_s19 = sshll.u32 %s1024_s18, 4  ;;  %s872_s19 = int_to_ptr.vmem [resolvable:$true] %s871_s19 }
  0x22   :  { %161 = vperm.xlu0 %979, %v103_v52   ;;  %v58_v56 = vld [vmem:[%s1369_s0 + $0xe8] sm:$0xff]  ;;  %v105_v57 = vld [vmem:[%s1371_s2 + $0x60] sm:$0xff]  ;;  %v107_v63 = vld [vmem:[%s1371_s2 + $0x70] sm:$0xff]  ;;  %p1002_p1 = scmp.lt.s32.totalorder %s872_s19, %s872_s19 }
  0x23   :  { %v106_v58 = vld [vmem:[%s1371_s2 + $0x68] sm:$0xff]  ;;  %v270_v59 = vsel %vm229_vm0, %v66_v54, 0  ;;  %v75_v60 = vpack.c.bf16 %v58_v56, %v57_v55  ;;  %v41_v61 = vld [vmem:[%s1369_s0 + $0x60] sm:$0xff]  ;;  %v108_v0 = vld [vmem:[%s1371_s2 + $0x78] sm:$0xff] }
  0x24   :  { %166 = vperm.xlu1 %980, %v104_v53   ;;  %v42_v62 = vld [vmem:[%s1369_s0 + $0x68] sm:$0xff]  ;;  %v59_v2 = vld [vmem:[%s1369_s0 + $0xf0] sm:$0xff]  ;;  %v60_v3 = vld [vmem:[%s1369_s0 + $0xf8] sm:$0xff] }
  0x25   :  { %v67_v1 = vpack.c.bf16 %v42_v62, %v41_v61  ;;  %v479_v4 = vld [vmem:[%s1373_s4] sm:$0xff]  ;;  %v480_v5 = vld [vmem:[%s1373_s4 + $0x8] sm:$0xff]  ;;  %v76_v8 = vpack.c.bf16 %v60_v3, %v59_v2  ;;  %v43_v9 = vld [vmem:[%s1369_s0 + $0x70] sm:$0xff] }
  0x26   :  { %912 = vmatpush3.bf16.xpose.msra.mxu0 %v267_v44  ;;  %171 = vperm.xlu0 %979, %v105_v57   ;;  %v44_v10 = vld [vmem:[%s1369_s0 + $0x78] sm:$0xff]  ;;  %v481_v11 = vld [vmem:[%s1373_s4 + $0x10] sm:$0xff]  ;;  %v483_v14 = vld [vmem:[%s1373_s4 + $0x20] sm:$0xff] }
  0x27   :  { %972 = vmatprep.subr.msk.bf16.mxu0 %vm229_vm0, %v74_v49  ;;  %v273_v6 = vsel %vm229_vm0, %v67_v1, 0  ;;  %v482_v12 = vld [vmem:[%s1373_s4 + $0x18] sm:$0xff]  ;;  %v68_v13 = vpack.c.bf16 %v44_v10, %v43_v9  ;;  %v484_v15 = vld [vmem:[%s1373_s4 + $0x28] sm:$0xff]  ;;  %v485_v17 = vld [vmem:[%s1373_s4 + $0x30] sm:$0xff] }
  0x28   :  { %176 = vperm.xlu1 %980, %v106_v58   ;;  %v486_v18 = vld [vmem:[%s1373_s4 + $0x38] sm:$0xff]  ;;  %v487_v19 = vld [vmem:[%s1373_s4 + $0x40] sm:$0xff]  ;;  %v488_v21 = vld [vmem:[%s1373_s4 + $0x48] sm:$0xff] }
  0x29   :  { %v276_v16 = vsel %vm229_vm0, %v68_v13, 0  ;;  %v982_v22 = vld [vmem:[%s1370_s1 + $0x8] sm:$0xff]   ;;  %v489_v23 = vld [vmem:[%s1373_s4 + $0x50] sm:$0xff]  ;;  %v490_v24 = vld [vmem:[%s1373_s4 + $0x58] sm:$0xff] }
  0x2a   :  { %181 = vperm.xlu0 %979, %v107_v63   ;;  %v491_v25 = vld [vmem:[%s1373_s4 + $0x60] sm:$0xff]  ;;  %v492_v26 = vld [vmem:[%s1373_s4 + $0x68] sm:$0xff]  ;;  %v493_v27 = vld [vmem:[%s1373_s4 + $0x70] sm:$0xff] }
  0x2b   :  { %v494_v28 = vld [vmem:[%s1373_s4 + $0x78] sm:$0xff]  ;;  %v985_v30 = vld [vmem:[%s1370_s1 + $0x20] sm:$0xff]   ;;  %v986_v31 = vld [vmem:[%s1370_s1 + $0x28] sm:$0xff]  }
  0x2c   :  { %186 = vperm.xlu1 %980, %v108_v0   ;;  %v984_v29 = vld [vmem:[%s1370_s1 + $0x18] sm:$0xff]   ;;  %v987_v32 = vld [vmem:[%s1370_s1 + $0x30] sm:$0xff]  }
  0x2d   :  { %v988_v33 = vld [vmem:[%s1370_s1 + $0x38] sm:$0xff]  }
  0x2e   :  { %914 = vmatpush3.bf16.xpose.msra.mxu0 %v270_v59  ;;  %497 = vperm.xlu0 %979, %v479_v4  }
  0x2f   :  { %973 = vmatprep.subr.msk.bf16.mxu0 %vm229_vm0, %v75_v60 }
  0x30   :  { %502 = vperm.xlu1 %980, %v480_v5  }
  0x32   :  { %507 = vperm.xlu0 %979, %v481_v11  }
  0x34   :  { %512 = vperm.xlu1 %980, %v482_v12  }
  0x36   :  { %916 = vmatpush3.bf16.xpose.msra.mxu0 %v273_v6  ;;  %517 = vperm.xlu0 %979, %v483_v14  }
  0x37   :  { %974 = vmatprep.subr.msk.bf16.mxu0 %vm229_vm0, %v76_v8 }
  0x38   :  { %522 = vperm.xlu1 %980, %v484_v15  }
  0x3a   :  { %527 = vperm.xlu0 %979, %v485_v17  }
  0x3c   :  { %532 = vperm.xlu1 %980, %v486_v18  }
  0x3e   :  { %918 = vmatpush3.bf16.xpose.msra.mxu0 %v276_v16  ;;  %537 = vperm.xlu0 %979, %v487_v19  }
  0x40   :  { %542 = vperm.xlu1 %980, %v488_v21  }
  0x42   :  { %547 = vperm.xlu0 %979, %v489_v23  }
  0x44   :  { %552 = vperm.xlu1 %980, %v490_v24  }
  0x45   :  { %920 = vmatmul.mubr.msk.bf16.vlgmr.msra.gmra.mrb[0].mxu0 %vm229_vm0, %v1111_v20  ;;  %v983_v20 = vld [vmem:[%s1370_s1 + $0x10] sm:$0xff]  }
  0x46   :  { %921 = vmatprep.mubr.msk.bf16.mxu0 %vm229_vm0, %v982_v22  ;;  %557 = vperm.xlu0 %979, %v491_v25  }
  0x48   :  { %562 = vperm.xlu1 %980, %v492_v26  }
  0x4a   :  { %567 = vperm.xlu0 %979, %v493_v27  }
  0x4c   :  { %572 = vperm.xlu1 %980, %v494_v28  }
  0x4d   :  { %922 = vmatmul.mubr.msk.bf16.gmra.mrb[4].mxu0 %vm229_vm0, %v982_v22 }
  0x4e   :  { %923 = vmatprep.mubr.msk.bf16.mxu0 %vm229_vm0, %v983_v20 }
  0x55   :  { %924 = vmatmul.mubr.msk.bf16.gmra.mrb[8].mxu0 %vm229_vm0, %v983_v20 }
  0x56   :  { %925 = vmatprep.mubr.msk.bf16.mxu0 %vm229_vm0, %v984_v29 }
  0x5d   :  { %926 = vmatmul.mubr.msk.bf16.gmra.mrb[12].mxu0 %vm229_vm0, %v984_v29 }
  0x5e   :  { %927 = vmatprep.mubr.msk.bf16.mxu0 %vm229_vm0, %v985_v30 }
  0x65   :  { %928 = vmatmul.mubr.msk.bf16.gmra.mrb[16].mxu0 %vm229_vm0, %v985_v30 }
  0x66   :  { %929 = vmatprep.mubr.msk.bf16.mxu0 %vm229_vm0, %v986_v31 }
  0x6d   :  { %930 = vmatmul.mubr.msk.bf16.gmra.mrb[20].mxu0 %vm229_vm0, %v986_v31 }
  0x6e   :  { %931 = vmatprep.mubr.msk.bf16.mxu0 %vm229_vm0, %v987_v32 }
  0x75   :  { %932 = vmatmul.mubr.msk.bf16.gmra.mrb[24].mxu0 %vm229_vm0, %v987_v32 }
  0x76   :  { %933 = vmatprep.mubr.msk.bf16.mxu0 %vm229_vm0, %v988_v33 }
  0x7d   :  { %934 = vmatmul.mubr.msk.bf16.gmra.mrb[28].mxu0 %vm229_vm0, %v988_v33 }
  0x86   :  { %v112_v34 = vpop.permute.xlu0 %111 }
  0x87   :  { %v122_v43 = vpop.permute.xlu1 %121 }
  0x8a   :  { %v117_v38 = vpop.permute.xlu0 %116 }
  0x8b   :  { %v127_v54 = vpop.permute.xlu1 %126 }
  0x8e   :  { %v132_v1 = vpop.permute.xlu0 %131 }
  0x8f   :  { %v137_v6 = vpop.permute.xlu1 %136 }
  0x92   :  { %v142_v18 = vpop.permute.xlu0 %141 }
  0x93   :  { %v147_v24 = vpop.permute.xlu1 %146 }
 0x118   :  { %v336_v35 = vpop.f32.mrb[0].mxu0 }
 0x119   :  { %v337_v36 = vadd.f32 %v336_v35, %v112_v34  ;;  %v338_v37 = vpop.f32.mrb[1].mxu0 }
 0x11a   :  { %v339_v39 = vadd.f32 %v338_v37, %v112_v34  ;;  %v340_v40 = vpop.f32.mrb[2].mxu0  ;;  %v152_v34 = vpop.permute.xlu0 %151 }
 0x11b   :  { %v341_v41 = vadd.f32 %v340_v40, %v117_v38  ;;  %v342_v42 = vpop.f32.mrb[3].mxu0  ;;  %v415_v45 = vmax.f32 %v337_v36, 0.0 }
 0x11c   :  { %v343_v44 = vadd.f32 %v342_v42, %v117_v38  ;;  %v416_v47 = vmax.f32 %v339_v39, 0.0  ;;  %v157_v39 = vpop.permute.xlu1 %156 }
 0x11d   :  { %v417_v46 = vmax.f32 %v341_v41, 0.0 }
 0x11e   :  { %v418_v48 = vmax.f32 %v343_v44, 0.0 }
 0x11f   :  { %v463_v49 = vpack.c.bf16 %v417_v46, %v415_v45 }
 0x120   :  { %v346_v50 = vpop.f32.mrb[4].mxu0  ;;  %v464_v51 = vpack.c.bf16 %v418_v48, %v416_v47 }
 0x121   :  { %v347_v52 = vadd.f32 %v346_v50, %v122_v43  ;;  %v348_v53 = vpop.f32.mrb[5].mxu0  ;;  %v162_v50 = vpop.permute.xlu0 %161 }
 0x122   :  { %v349_v55 = vadd.f32 %v348_v53, %v122_v43  ;;  %v350_v56 = vpop.f32.mrb[6].mxu0  ;;  %623 = vmatprep.subr.bf16.mxu1 %v464_v51 }
 0x123   :  { %v351_v57 = vadd.f32 %v350_v56, %v127_v54  ;;  %v352_v58 = vpop.f32.mrb[7].mxu0  ;;  %624 = vmatpush1.bf16.msra.mxu1 %v463_v49  ;;  %v419_v60 = vmax.f32 %v347_v52, 0.0 }
 0x124   :  { %v353_v59 = vadd.f32 %v352_v58, %v127_v54  ;;  %v420_v62 = vmax.f32 %v349_v55, 0.0  ;;  %v167_v55 = vpop.permute.xlu1 %166 }
 0x125   :  { %v421_v61 = vmax.f32 %v351_v57, 0.0 }
 0x126   :  { %v422_v63 = vmax.f32 %v353_v59, 0.0 }
 0x127   :  { %v465_v0 = vpack.c.bf16 %v421_v61, %v419_v60 }
 0x128   :  { %v466_v2 = vpack.c.bf16 %v422_v63, %v420_v62  ;;  %v356_v3 = vpop.f32.mrb[8].mxu0 }
 0x129   :  { %v357_v4 = vadd.f32 %v356_v3, %v132_v1  ;;  %v358_v5 = vpop.f32.mrb[9].mxu0 }
 0x12a   :  { %v359_v8 = vadd.f32 %v358_v5, %v132_v1  ;;  %v360_v9 = vpop.f32.mrb[10].mxu0  ;;  %625 = vmatprep.subr.bf16.mxu1 %v466_v2  ;;  %v172_v2 = vpop.permute.xlu0 %171 }
 0x12b   :  { %v361_v10 = vadd.f32 %v360_v9, %v137_v6  ;;  %v362_v11 = vpop.f32.mrb[11].mxu0  ;;  %626 = vmatpush1.bf16.msra.mxu1 %v465_v0  ;;  %v423_v13 = vmax.f32 %v357_v4, 0.0 }
 0x12c   :  { %v363_v12 = vadd.f32 %v362_v11, %v137_v6  ;;  %v424_v15 = vmax.f32 %v359_v8, 0.0  ;;  %v177_v8 = vpop.permute.xlu1 %176 }
 0x12d   :  { %v425_v14 = vmax.f32 %v361_v10, 0.0 }
 0x12e   :  { %v426_v16 = vmax.f32 %v363_v12, 0.0 }
 0x12f   :  { %v467_v17 = vpack.c.bf16 %v425_v14, %v423_v13 }
 0x130   :  { %v468_v19 = vpack.c.bf16 %v426_v16, %v424_v15  ;;  %v366_v21 = vpop.f32.mrb[12].mxu0 }
 0x131   :  { %v367_v22 = vadd.f32 %v366_v21, %v142_v18  ;;  %v368_v23 = vpop.f32.mrb[13].mxu0 }
 0x132   :  { %v369_v25 = vadd.f32 %v368_v23, %v142_v18  ;;  %v370_v26 = vpop.f32.mrb[14].mxu0  ;;  %627 = vmatprep.subr.bf16.mxu1 %v468_v19  ;;  %v182_v19 = vpop.permute.xlu0 %181 }
 0x133   :  { %v371_v20 = vadd.f32 %v370_v26, %v147_v24  ;;  %v372_v27 = vpop.f32.mrb[15].mxu0  ;;  %628 = vmatpush1.bf16.msra.mxu1 %v467_v17  ;;  %v427_v29 = vmax.f32 %v367_v22, 0.0 }
 0x134   :  { %v373_v28 = vadd.f32 %v372_v27, %v147_v24  ;;  %v428_v31 = vmax.f32 %v369_v25, 0.0  ;;  %v187_v25 = vpop.permute.xlu1 %186 }
 0x135   :  { %v429_v30 = vmax.f32 %v371_v20, 0.0 }
 0x136   :  { %v430_v32 = vmax.f32 %v373_v28, 0.0 }
 0x137   :  { %v469_v33 = vpack.c.bf16 %v429_v30, %v427_v29 }
 0x138   :  { %v470_v35 = vpack.c.bf16 %v430_v32, %v428_v31  ;;  %v376_v36 = vpop.f32.mrb[16].mxu0 }
 0x139   :  { %v377_v37 = vadd.f32 %v376_v36, %v152_v34  ;;  %v378_v38 = vpop.f32.mrb[17].mxu0  ;;  %v989_v36 = vld [vmem:[%s1372_s3] sm:$0xff]  }
 0x13a   :  { %v379_v40 = vadd.f32 %v378_v38, %v152_v34  ;;  %v380_v41 = vpop.f32.mrb[18].mxu0  ;;  %629 = vmatprep.subr.bf16.mxu1 %v470_v35  ;;  %v991_v38 = vld [vmem:[%s1372_s3 + $0x10] sm:$0xff]  }
 0x13b   :  { %v381_v42 = vadd.f32 %v380_v41, %v157_v39  ;;  %v382_v43 = vpop.f32.mrb[19].mxu0  ;;  %630 = vmatpush1.bf16.msra.mxu1 %v469_v33  ;;  %v431_v45 = vmax.f32 %v377_v37, 0.0  ;;  %v990_v37 = vld [vmem:[%s1372_s3 + $0x8] sm:$0xff]  }
 0x13c   :  { %v383_v44 = vadd.f32 %v382_v43, %v157_v39  ;;  %v432_v47 = vmax.f32 %v379_v40, 0.0  ;;  %v992_v39 = vld [vmem:[%s1372_s3 + $0x18] sm:$0xff]   ;;  %v993_v40 = vld [vmem:[%s1372_s3 + $0x20] sm:$0xff]   ;;  %v994_v41 = vld [vmem:[%s1372_s3 + $0x28] sm:$0xff]  }
 0x13d   :  { %v433_v46 = vmax.f32 %v381_v42, 0.0  ;;  %v995_v42 = vld [vmem:[%s1372_s3 + $0x30] sm:$0xff]   ;;  %v996_v43 = vld [vmem:[%s1372_s3 + $0x38] sm:$0xff]  }
 0x13e   :  { %v434_v48 = vmax.f32 %v383_v44, 0.0  ;;  %v1022_v44 = vmov 0.0  }
 0x13f   :  { %v471_v49 = vpack.c.bf16 %v433_v46, %v431_v45  ;;  %v498_v45 = vpop.permute.xlu0 %497 }
 0x140   :  { %v472_v51 = vpack.c.bf16 %v434_v48, %v432_v47  ;;  %v386_v52 = vpop.f32.mrb[20].mxu0 }
 0x141   :  { %v387_v53 = vadd.f32 %v386_v52, %v162_v50  ;;  %v388_v54 = vpop.f32.mrb[21].mxu0 }
 0x142   :  { %v389_v56 = vadd.f32 %v388_v54, %v162_v50  ;;  %v390_v57 = vpop.f32.mrb[22].mxu0  ;;  %631 = vmatprep.subr.bf16.mxu1 %v472_v51 }
 0x143   :  { %v391_v58 = vadd.f32 %v390_v57, %v167_v55  ;;  %v392_v59 = vpop.f32.mrb[23].mxu0  ;;  %632 = vmatpush1.bf16.msra.mxu1 %v471_v49  ;;  %v435_v61 = vmax.f32 %v387_v53, 0.0  ;;  %v503_v49 = vpop.permute.xlu1 %502 }
 0x144   :  { %v393_v60 = vadd.f32 %v392_v59, %v167_v55  ;;  %v436_v63 = vmax.f32 %v389_v56, 0.0  ;;  %v508_v59 = vpop.permute.xlu0 %507 }
 0x145   :  { %v437_v62 = vmax.f32 %v391_v58, 0.0 }
 0x146   :  { %v438_v0 = vmax.f32 %v393_v60, 0.0 }
 0x147   :  { %v473_v1 = vpack.c.bf16 %v437_v62, %v435_v61 }
 0x148   :  { %v474_v3 = vpack.c.bf16 %v438_v0, %v436_v63  ;;  %v396_v4 = vpop.f32.mrb[24].mxu0  ;;  %v513_v0 = vpop.permute.xlu1 %512 }
 0x149   :  { %v397_v5 = vadd.f32 %v396_v4, %v172_v2  ;;  %v398_v6 = vpop.f32.mrb[25].mxu0 }
 0x14a   :  { %v399_v9 = vadd.f32 %v398_v6, %v172_v2  ;;  %v400_v10 = vpop.f32.mrb[26].mxu0  ;;  %633 = vmatprep.subr.bf16.mxu1 %v474_v3 }
 0x14b   :  { %v401_v11 = vadd.f32 %v400_v10, %v177_v8  ;;  %v402_v12 = vpop.f32.mrb[27].mxu0  ;;  %634 = vmatpush1.bf16.msra.mxu1 %v473_v1  ;;  %v439_v14 = vmax.f32 %v397_v5, 0.0 }
 0x14c   :  { %v403_v13 = vadd.f32 %v402_v12, %v177_v8  ;;  %v440_v16 = vmax.f32 %v399_v9, 0.0  ;;  %v518_v12 = vpop.permute.xlu0 %517 }
 0x14d   :  { %v441_v15 = vmax.f32 %v401_v11, 0.0 }
 0x14e   :  { %v442_v17 = vmax.f32 %v403_v13, 0.0 }
 0x14f   :  { %v475_v18 = vpack.c.bf16 %v441_v15, %v439_v14 }
 0x150   :  { %v476_v21 = vpack.c.bf16 %v442_v17, %v440_v16  ;;  %v406_v22 = vpop.f32.mrb[28].mxu0  ;;  %v523_v17 = vpop.permute.xlu1 %522 }
 0x151   :  { %v407_v23 = vadd.f32 %v406_v22, %v182_v19  ;;  %v408_v24 = vpop.f32.mrb[29].mxu0 }
 0x152   :  { %v409_v26 = vadd.f32 %v408_v24, %v182_v19  ;;  %v410_v20 = vpop.f32.mrb[30].mxu0  ;;  %635 = vmatprep.subr.bf16.mxu1 %v476_v21 }
 0x153   :  { %v411_v27 = vadd.f32 %v410_v20, %v187_v25  ;;  %v412_v28 = vpop.f32.mrb[31].mxu0  ;;  %636 = vmatpush1.bf16.msra.mxu1 %v475_v18  ;;  %v443_v30 = vmax.f32 %v407_v23, 0.0 }
 0x154   :  { %v413_v29 = vadd.f32 %v412_v28, %v187_v25  ;;  %v444_v32 = vmax.f32 %v409_v26, 0.0  ;;  %v528_v28 = vpop.permute.xlu0 %527 }
 0x155   :  { %v445_v31 = vmax.f32 %v411_v27, 0.0 }
 0x156   :  { %v446_v33 = vmax.f32 %v413_v29, 0.0 }
 0x157   :  { %v477_v34 = vpack.c.bf16 %v445_v31, %v443_v30 }
 0x158   :  { %v478_v35 = vpack.c.bf16 %v446_v33, %v444_v32  ;;  %v533_v33 = vpop.permute.xlu1 %532 }
 0x15a   :  { %637 = vmatprep.subr.bf16.mxu1 %v478_v35 }
 0x15b   :  { %638 = vmatpush1.bf16.msra.mxu1 %v477_v34 }
 0x15e   :  { %656 = vmatmul.mubr.bf16.vlgmr.msra.gmra.mrb[0].mxu1 %v989_v36 }
 0x15f   :  { %665 = vmatprep.mubr.bf16.mxu1 %v1021_v7 }
 0x166   :  { %666 = vmatmul.mubr.bf16.gmra.mrb[4].mxu1 %v990_v37 }
 0x167   :  { %675 = vmatprep.mubr.bf16.mxu1 %v1021_v7 }
 0x16e   :  { %676 = vmatmul.mubr.bf16.gmra.mrb[8].mxu1 %v991_v38 }
 0x16f   :  { %685 = vmatprep.mubr.bf16.mxu1 %v1021_v7 }
 0x176   :  { %686 = vmatmul.mubr.bf16.gmra.mrb[12].mxu1 %v992_v39 }
 0x177   :  { %695 = vmatprep.mubr.bf16.mxu1 %v1021_v7 }
 0x17e   :  { %696 = vmatmul.mubr.bf16.gmra.mrb[16].mxu1 %v993_v40 }
 0x17f   :  { %705 = vmatprep.mubr.bf16.mxu1 %v1021_v7 }
 0x186   :  { %706 = vmatmul.mubr.bf16.gmra.mrb[20].mxu1 %v994_v41 }
 0x187   :  { %715 = vmatprep.mubr.bf16.mxu1 %v1021_v7 }
 0x18e   :  { %716 = vmatmul.mubr.bf16.gmra.mrb[24].mxu1 %v995_v42 }
 0x18f   :  { %725 = vmatprep.mubr.bf16.mxu1 %v1021_v7 }
 0x196   :  { %726 = vmatmul.mubr.bf16.gmra.mrb[28].mxu1 %v996_v43 }
 0x197   :  { %835 = vmatprep.mubr.f32.mxu1 %v1022_v44  ;;  %v538_v44 = vpop.permute.xlu0 %537 }
 0x231   :  { %v657_v46 = vpop.f32.mrb[0].mxu1 }
 0x232   :  { %v658_v47 = vadd.f32 %v657_v46, %v498_v45  ;;  %v659_v48 = vpop.f32.mrb[1].mxu1 }
 0x233   :  { %v660_v50 = vadd.f32 %v659_v48, %v498_v45  ;;  %v661_v51 = vpop.f32.mrb[2].mxu1 }
 0x234   :  { %v662_v52 = vadd.f32 %v661_v51, %v503_v49  ;;  %v663_v53 = vpop.f32.mrb[3].mxu1  ;;  %v736_v55 = vmax.f32 %v658_v47, 0.0 }
 0x235   :  { %v664_v54 = vadd.f32 %v663_v53, %v503_v49  ;;  %v737_v7 = vmax.f32 %v660_v50, 0.0  ;;  %v543_v49 = vpop.permute.xlu1 %542 }
 0x236   :  { %v738_v56 = vmax.f32 %v662_v52, 0.0 }
 0x237   :  { %v739_v57 = vmax.f32 %v664_v54, 0.0 }
 0x238   :  { %v937_v58 = vpack.c.bf16 %v738_v56, %v736_v55 }
 0x239   :  { %v935_v60 = vpack.c.bf16 %v739_v57, %v737_v7  ;;  %v667_v61 = vpop.f32.mrb[4].mxu1 }
 0x23a   :  { %v668_v62 = vadd.f32 %v667_v61, %v508_v59  ;;  %v669_v63 = vpop.f32.mrb[5].mxu1 }
 0x23b   :  { %v670_v1 = vadd.f32 %v669_v63, %v508_v59  ;;  %v671_v2 = vpop.f32.mrb[6].mxu1  ;;  %936 = vmatprep.subr.bf16.mxu1 %v935_v60  ;;  %v548_v59 = vpop.permute.xlu0 %547 }
 0x23c   :  { %v672_v3 = vadd.f32 %v671_v2, %v513_v0  ;;  %v673_v4 = vpop.f32.mrb[7].mxu1  ;;  %938 = vmatpush1.bf16.msra.mxu1 %v937_v58  ;;  %v740_v6 = vmax.f32 %v668_v62, 0.0 }
 0x23d   :  { %v674_v5 = vadd.f32 %v673_v4, %v513_v0  ;;  %v741_v9 = vmax.f32 %v670_v1, 0.0  ;;  %v553_v0 = vpop.permute.xlu1 %552 }
 0x23e   :  { %v742_v8 = vmax.f32 %v672_v3, 0.0 }
 0x23f   :  { %v743_v10 = vmax.f32 %v674_v5, 0.0 }
 0x240   :  { %v941_v11 = vpack.c.bf16 %v742_v8, %v740_v6 }
 0x241   :  { %v939_v13 = vpack.c.bf16 %v743_v10, %v741_v9  ;;  %v677_v14 = vpop.f32.mrb[8].mxu1 }
 0x242   :  { %v678_v15 = vadd.f32 %v677_v14, %v518_v12  ;;  %v679_v16 = vpop.f32.mrb[9].mxu1 }
 0x243   :  { %v680_v18 = vadd.f32 %v679_v16, %v518_v12  ;;  %v681_v19 = vpop.f32.mrb[10].mxu1  ;;  %940 = vmatprep.subr.bf16.mxu1 %v939_v13  ;;  %v558_v12 = vpop.permute.xlu0 %557 }
 0x244   :  { %v682_v21 = vadd.f32 %v681_v19, %v523_v17  ;;  %v683_v22 = vpop.f32.mrb[11].mxu1  ;;  %942 = vmatpush1.bf16.msra.mxu1 %v941_v11  ;;  %v744_v24 = vmax.f32 %v678_v15, 0.0 }
 0x245   :  { %v684_v23 = vadd.f32 %v683_v22, %v523_v17  ;;  %v745_v26 = vmax.f32 %v680_v18, 0.0  ;;  %v563_v17 = vpop.permute.xlu1 %562 }
 0x246   :  { %v746_v25 = vmax.f32 %v682_v21, 0.0 }
 0x247   :  { %v747_v20 = vmax.f32 %v684_v23, 0.0 }
 0x248   :  { %v945_v27 = vpack.c.bf16 %v746_v25, %v744_v24 }
 0x249   :  { %v943_v29 = vpack.c.bf16 %v747_v20, %v745_v26  ;;  %v687_v30 = vpop.f32.mrb[12].mxu1 }
 0x24a   :  { %v688_v31 = vadd.f32 %v687_v30, %v528_v28  ;;  %v689_v32 = vpop.f32.mrb[13].mxu1 }
 0x24b   :  { %v690_v34 = vadd.f32 %v689_v32, %v528_v28  ;;  %v691_v35 = vpop.f32.mrb[14].mxu1  ;;  %944 = vmatprep.subr.bf16.mxu1 %v943_v29  ;;  %v568_v28 = vpop.permute.xlu0 %567 }
 0x24c   :  { %v692_v36 = vadd.f32 %v691_v35, %v533_v33  ;;  %v693_v37 = vpop.f32.mrb[15].mxu1  ;;  %946 = vmatpush1.bf16.msra.mxu1 %v945_v27  ;;  %v748_v39 = vmax.f32 %v688_v31, 0.0 }
 0x24d   :  { %v694_v38 = vadd.f32 %v693_v37, %v533_v33  ;;  %v749_v41 = vmax.f32 %v690_v34, 0.0  ;;  %v573_v33 = vpop.permute.xlu1 %572 }
 0x24e   :  { %v750_v40 = vmax.f32 %v692_v36, 0.0 }
 0x24f   :  { %v751_v42 = vmax.f32 %v694_v38, 0.0 }
 0x250   :  { %v949_v43 = vpack.c.bf16 %v750_v40, %v748_v39 }
 0x251   :  { %v947_v45 = vpack.c.bf16 %v751_v42, %v749_v41  ;;  %v697_v46 = vpop.f32.mrb[16].mxu1 }
 0x252   :  { %v698_v47 = vadd.f32 %v697_v46, %v538_v44  ;;  %v699_v48 = vpop.f32.mrb[17].mxu1  ;;  %v1023_v46 = vmov 1966171168  }
 0x253   :  { %v700_v50 = vadd.f32 %v699_v48, %v538_v44  ;;  %v701_v51 = vpop.f32.mrb[18].mxu1  ;;  %948 = vmatprep.subr.bf16.mxu1 %v947_v45  ;;  %v768_v45 = vld [vmem:[%s1374_s5] sm:$0x1]  ;;  %v848_v48 = vlaneseq  ;;  %s997_s5 = scalar_lea.vmem %s872_s19, 32 }
 0x254   :  { %v702_v52 = vadd.f32 %v701_v51, %v543_v49  ;;  %v703_v53 = vpop.f32.mrb[19].mxu1  ;;  %950 = vmatpush1.bf16.msra.mxu1 %v949_v43  ;;  %v752_v55 = vmax.f32 %v698_v47, 0.0  ;;  %v846_v47 = vunpack.c.l.s4 %v1023_v46  ;;  %p998_p0 = scmp.ne.s32.totalorder %s872_s19, %s997_s5  ;;  %p1003_p2 = scmp.lt.s32.totalorder %s997_s5, %s997_s5 }
 0x255   :  { %v704_v54 = vadd.f32 %v703_v53, %v543_v49  ;;  %v753_v7 = vmax.f32 %v700_v50, 0.0  ;;  %v770_v49 = vstv %s1375_s6  ;;  %v849_v51 = vshrl.u32 %v848_v48, 7 }
 0x256   :  { %v754_v56 = vmax.f32 %v702_v52, 0.0  ;;  %v847_v50 = vunpack.c.0.s8 %v846_v47  ;;  %vm862_vm1 = vcmp.lt.s32.totalorder %v848_v48, 256  ;;  %p1004_p3 = por %p1003_p2, %p1002_p1 }
 0x257   :  { %v755_v57 = vmax.f32 %v704_v54, 0.0 }
 0x258   :  { %v953_v58 = vpack.c.bf16 %v754_v56, %v752_v55  ;;  %v850_v56 = vsub.s32 %v847_v50, %v849_v51  ;;  %p1005_p4 = pnand %p1004_p3, %p998_p0 }
 0x259   :  { %v951_v60 = vpack.c.bf16 %v755_v57, %v753_v7  ;;  %v707_v61 = vpop.f32.mrb[20].mxu1 }
 0x25a   :  { %v708_v62 = vadd.f32 %v707_v61, %v548_v59  ;;  %v709_v63 = vpop.f32.mrb[21].mxu1 }
 0x25b   :  { %v710_v1 = vadd.f32 %v709_v63, %v548_v59  ;;  %v711_v2 = vpop.f32.mrb[22].mxu1  ;;  %952 = vmatprep.subr.bf16.mxu1 %v951_v60 }
 0x25c   :  { %v712_v3 = vadd.f32 %v711_v2, %v553_v0  ;;  %v713_v4 = vpop.f32.mrb[23].mxu1  ;;  %954 = vmatpush1.bf16.msra.mxu1 %v953_v58  ;;  %v756_v6 = vmax.f32 %v708_v62, 0.0 }
 0x25d   :  { %v714_v5 = vadd.f32 %v713_v4, %v553_v0  ;;  %v757_v9 = vmax.f32 %v710_v1, 0.0 }
 0x25e   :  { %v758_v8 = vmax.f32 %v712_v3, 0.0 }
 0x25f   :  { %v759_v10 = vmax.f32 %v714_v5, 0.0 }
 0x260   :  { %v957_v11 = vpack.c.bf16 %v758_v8, %v756_v6 }
 0x261   :  { %v955_v13 = vpack.c.bf16 %v759_v10, %v757_v9  ;;  %v717_v14 = vpop.f32.mrb[24].mxu1 }
 0x262   :  { %v718_v15 = vadd.f32 %v717_v14, %v558_v12  ;;  %v719_v16 = vpop.f32.mrb[25].mxu1 }
 0x263   :  { %v720_v18 = vadd.f32 %v719_v16, %v558_v12  ;;  %v721_v19 = vpop.f32.mrb[26].mxu1  ;;  %956 = vmatprep.subr.bf16.mxu1 %v955_v13 }
 0x264   :  { %v722_v21 = vadd.f32 %v721_v19, %v563_v17  ;;  %v723_v22 = vpop.f32.mrb[27].mxu1  ;;  %958 = vmatpush1.bf16.msra.mxu1 %v957_v11  ;;  %v760_v24 = vmax.f32 %v718_v15, 0.0 }
 0x265   :  { %v724_v23 = vadd.f32 %v723_v22, %v563_v17  ;;  %v761_v26 = vmax.f32 %v720_v18, 0.0 }
 0x266   :  { %v762_v25 = vmax.f32 %v722_v21, 0.0 }
 0x267   :  { %v763_v20 = vmax.f32 %v724_v23, 0.0 }
 0x268   :  { %v961_v27 = vpack.c.bf16 %v762_v25, %v760_v24 }
 0x269   :  { %v959_v29 = vpack.c.bf16 %v763_v20, %v761_v26  ;;  %v727_v30 = vpop.f32.mrb[28].mxu1 }
 0x26a   :  { %v728_v31 = vadd.f32 %v727_v30, %v568_v28  ;;  %v729_v32 = vpop.f32.mrb[29].mxu1 }
 0x26b   :  { %v730_v34 = vadd.f32 %v729_v32, %v568_v28  ;;  %v731_v35 = vpop.f32.mrb[30].mxu1  ;;  %960 = vmatprep.subr.bf16.mxu1 %v959_v29 }
 0x26c   :  { %v732_v36 = vadd.f32 %v731_v35, %v573_v33  ;;  %v733_v37 = vpop.f32.mrb[31].mxu1  ;;  %962 = vmatpush1.bf16.msra.mxu1 %v961_v27  ;;  %v764_v39 = vmax.f32 %v728_v31, 0.0 }
 0x26d   :  { %v734_v38 = vadd.f32 %v733_v37, %v573_v33  ;;  %v765_v41 = vmax.f32 %v730_v34, 0.0 }
 0x26e   :  { %v766_v40 = vmax.f32 %v732_v36, 0.0 }
 0x26f   :  { %v767_v42 = vmax.f32 %v734_v38, 0.0 }
 0x270   :  { %v965_v43 = vpack.c.bf16 %v766_v40, %v764_v39 }
 0x271   :  { %v963_v44 = vpack.c.bf16 %v767_v42, %v765_v41 }
 0x273   :  { %964 = vmatprep.subr.bf16.mxu1 %v963_v44 }
 0x274   :  { %966 = vmatpush1.bf16.msra.mxu1 %v965_v43 }
 0x277   :  { %836 = vmatmul.mubr.f32.vlgmr.msra.gmra.mrb[32].mxu1 %v768_v45 }
 0x34a   :  { %v837_v52 = vpop.f32.mrb[32].mxu1 }
 0x34b   :  { %v838_v53 = vadd.f32 %v837_v52, %v770_v49  ;;  %v839_v54 = vpop.f32.mrb[33].mxu1 }
 0x34c   :  { %v840_v55 = vadd.f32 %v839_v54, %v770_v49 }
 0x34e   :  { %v844_v7 = vcombine.low %v838_v53, %v840_v55 }
 0x350   :  { %v851_v57 = vrot.slane %v844_v7, %v850_v56 }
 0x352   :  { %v858_v58 = vrot.slane %v851_v57, %v850_v56 }
 0x354   :  { %864 = vst.msk [vmem:[#allocation3] sm:$0x3] %vm862_vm1, %v858_v58 }
 0x355   :  { %1008 = shalt.err (!%p1005_p4)
}
 0x356   :  { %s1009_s20 = scalar_lea.hbm %s1376_s7, 32 }
 0x357   :  { %p1010_p5 = scmp.ne.s32.totalorder %s1376_s7, %s1009_s20  ;;  %p1013_p6 = scmp.lt.u32.totalorder %s1009_s20, %s1376_s7 }
 0x359   :  { %p1015_p7 = pnand %p1013_p6, %p1010_p5 }
 0x35b   :  { %1018 = shalt.err (!%p1015_p7)
}
 0x35c   :  { %874 = dma.vmem_to_hbm [thread:$0]  %s872_s19, 32, %s1376_s7, [#allocation4]  }
 0x35d   :  { %1019 = dma.done.wait [#allocation4], 32  }
 0x35e   :  { %1020 = vsyncadd [#allocation4], 4294967264 }
 0x35f   :  { %878 = vsyncpa [#allocation4], 1 }

</bundles_post_ra>
